<compile_context>
chip_gen: v6e
topology: v6e:2x2x1
jax: 0.10.0
libtpu: 0.0.40
codegen_flags: <defaults>
</compile_context>

<pallas_src>
import functools

import jax
import jax.numpy as jnp
from jax.experimental import pallas as pl
from jax.experimental.pallas import tpu as pltpu

BN_EPS = 1e-5
LAYER_CFG = ((64, 3), (128, 4), (256, 6), (512, 3))


def _round_up(x, m):
    return (x + m - 1) // m * m


def _choose_tn(n):
    np_ = _round_up(n, 128)
    for cand in (512, 256, 128):
        if np_ % cand == 0:
            return np_, cand
    return np_, 128


def _choose_tm_gemm(m):
    # Single full-dim block when M is small (no padding of tiny late-stage Ms).
    if m <= 256:
        mp = _round_up(m, 8)
        return mp, mp
    return _round_up(m, 256), 256


def _choose_tm_conv(p):
    return min(256, _round_up(p, 16))


def _pad2d(x, rows, cols):
    pr, pc = rows - x.shape[0], cols - x.shape[1]
    if pr or pc:
        x = jnp.pad(x, ((0, pr), (0, pc)))
    return x


# --------------- fused GEMM + per-column scale/bias (+residual, +ReLU) -------
def _gemm_kernel(a_ref, b_ref, s_ref, c_ref, o_ref, *, relu):
    y = jnp.dot(a_ref[...], b_ref[...], preferred_element_type=jnp.float32)
    y = y * s_ref[...] + c_ref[...]
    if relu:
        y = jnp.maximum(y, 0.0)
    o_ref[...] = y.astype(o_ref.dtype)


def _gemm_res_kernel(a_ref, b_ref, s_ref, c_ref, r_ref, o_ref, *, relu):
    y = jnp.dot(a_ref[...], b_ref[...], preferred_element_type=jnp.float32)
    y = y * s_ref[...] + c_ref[...] + r_ref[...].astype(jnp.float32)
    if relu:
        y = jnp.maximum(y, 0.0)
    o_ref[...] = y.astype(o_ref.dtype)


@functools.lru_cache(maxsize=None)
def _gemm_fn(Mp, Kp, Np, TM, TN, relu, has_res, out_dtype_name):
    out_dtype = jnp.dtype(out_dtype_name)
    grid = (Np // TN, Mp // TM)  # j outer -> B/scale/bias fetched once per j
    in_specs = [
        pl.BlockSpec((TM, Kp), lambda j, i: (i, 0)),
        pl.BlockSpec((Kp, TN), lambda j, i: (0, j)),
        pl.BlockSpec((1, TN), lambda j, i: (0, j)),
        pl.BlockSpec((1, TN), lambda j, i: (0, j)),
    ]
    if has_res:
        in_specs.append(pl.BlockSpec((TM, TN), lambda j, i: (i, j)))
        kern = functools.partial(_gemm_res_kernel, relu=relu)
    else:
        kern = functools.partial(_gemm_kernel, relu=relu)
    f = pl.pallas_call(
        kern,
        out_shape=jax.ShapeDtypeStruct((Mp, Np), out_dtype),
        grid_spec=pltpu.PrefetchScalarGridSpec(
            num_scalar_prefetch=0,
            grid=grid,
            in_specs=in_specs,
            out_specs=pl.BlockSpec((TM, TN), lambda j, i: (i, j)),
        ),
        compiler_params=pltpu.CompilerParams(
            dimension_semantics=("parallel", "parallel")),
    )
    return jax.jit(f)


def matmul_prepped(a, warr, c, relu=False, residual=None,
                   out_dtype=jnp.bfloat16):
    """a: (M, K) bf16 activation; warr holds pre-padded bf16 weight (Kp, Np)
    plus f32 scale/bias (1, Np) prepared once in prepare_params."""
    M, K = a.shape
    Kp, Np = warr["w"].shape
    Mp, TM = _choose_tm_gemm(M)
    TN = c["tn"]
    if M != Mp or K != Kp:
        a = jnp.pad(a, ((0, Mp - M), (0, Kp - K)))
    args = [a, warr["w"], warr["s"], warr["c"]]
    if residual is not None:
        r = residual
        if r.shape != (Mp, Np):
            r = jnp.pad(r, ((0, Mp - r.shape[0]), (0, Np - r.shape[1])))
        args.append(r)
    out = _gemm_fn(Mp, Kp, Np, TM, TN, bool(relu), residual is not None,
                   jnp.dtype(out_dtype).name)(*args)
    return out[:M, :c["n"]]


# -------- stride-1 3x3 conv as shifted-window GEMM (no HBM im2col) -----------
def _conv_s1_kernel(a0_ref, a1_ref, b_ref, s_ref, c_ref, o_ref, win_ref,
                    *, offsets, tm, cin, relu):
    # a0 = activation rows [i*tm, (i+1)*tm), a1 = rows [(i+1)*tm, (i+2)*tm).
    # Window for kernel offset `off` is rows [i*tm + off, i*tm + off + tm),
    # assembled in VMEM from the two resident blocks.
    if cin % 128 == 0:
        # Lane-aligned channel count: assemble all taps into one (TM, 9*Cin)
        # buffer (aligned full-tile column writes) and issue a single big dot.
        for idx, off in enumerate(offsets):
            lo = idx * cin
            if off == 0:
                win_ref[:, lo:lo + cin] = a0_ref[...]
            else:
                win_ref[0:tm - off, lo:lo + cin] = a0_ref[off:tm, :]
                win_ref[tm - off:tm, lo:lo + cin] = a1_ref[0:off, :]
        y = jnp.dot(win_ref[...], b_ref[...],
                    preferred_element_type=jnp.float32)
    else:
        # Cin=64 (layer 1): per-tap dots with a register accumulator and a
        # double-buffered window scratch (assembly overlaps previous matmul).
        y = None
        for idx, off in enumerate(offsets):
            base = (idx % 2) * tm
            if off == 0:
                win_ref[base:base + tm, :] = a0_ref[...]
            else:
                win_ref[base:base + tm - off, :] = a0_ref[off:tm, :]
                win_ref[base + tm - off:base + tm, :] = a1_ref[0:off, :]
            part = jnp.dot(win_ref[base:base + tm, :],
                           b_ref[idx * cin:(idx + 1) * cin, :],
                           preferred_element_type=jnp.float32)
            y = part if y is None else y + part
    y = y * s_ref[...] + c_ref[...]
    if relu:
        y = jnp.maximum(y, 0.0)
    o_ref[...] = y.astype(o_ref.dtype)


@functools.lru_cache(maxsize=None)
def _conv_s1_fn(Mtiles, TM, Cin, Wp, Np, TN, relu):
    K = 9 * Cin
    offsets = tuple(dy * Wp + dx for dy in range(3) for dx in range(3))
    kern = functools.partial(_conv_s1_kernel, offsets=offsets, tm=TM, cin=Cin,
                             relu=relu)
    if Cin % 128 == 0:
        win_scratch = pltpu.VMEM((TM, K), jnp.bfloat16)
    else:
        win_scratch = pltpu.VMEM((2 * TM, Cin), jnp.bfloat16)
    grid = (Np // TN, Mtiles)
    f = pl.pallas_call(
        kern,
        out_shape=jax.ShapeDtypeStruct((Mtiles * TM, Np), jnp.bfloat16),
        grid_spec=pltpu.PrefetchScalarGridSpec(
            num_scalar_prefetch=0,
            grid=grid,
            in_specs=[
                pl.BlockSpec((TM, Cin), lambda j, i: (i, 0)),
                pl.BlockSpec((TM, Cin), lambda j, i: (i + 1, 0)),
                pl.BlockSpec((K, TN), lambda j, i: (0, j)),
                pl.BlockSpec((1, TN), lambda j, i: (0, j)),
                pl.BlockSpec((1, TN), lambda j, i: (0, j)),
            ],
            out_specs=pl.BlockSpec((TM, TN), lambda j, i: (i, j)),
            scratch_shapes=[win_scratch],
        ),
        compiler_params=pltpu.CompilerParams(
            dimension_semantics=("parallel", "parallel")),
    )
    return jax.jit(f)


def conv3x3_s1_prepped(x, warr, c):
    N, H, W, Cin = x.shape
    Hp, Wp = H + 2, W + 2
    xp = jnp.pad(x, ((0, 0), (1, 1), (1, 1), (0, 0)))
    P = N * Hp * Wp                      # outputs computed on the padded grid
    TM = _choose_tm_conv(P)
    Mtiles = -(-P // TM)
    a = jnp.pad(xp.reshape(P, Cin), ((0, (Mtiles + 1) * TM - P), (0, 0)))
    Np = warr["w"].shape[1]
    TN = c["tn"]
    y = _conv_s1_fn(Mtiles, TM, Cin, Wp, Np, TN, bool(c["relu"]))(
        a, a, warr["w"], warr["s"], warr["c"])
    # TODO(synk): rows with padded hp/wp are overcomputed and discarded here
    # (matters only for the tiny late-stage spatial sizes).
    return y[:P, :c["n"]].reshape(N, Hp, Wp, c["n"])[:, :H, :W, :]


# ----------------------- general conv fallback (im2col, bf16) ----------------
def conv_im2col_prepped(x, warr, c):
    # TODO(synk): tap gather for the 7x7/s2 stem and 3x3/s2 convs is still
    # XLA strided-slice + concatenate (4 convs total); could be moved in-kernel.
    N, H, W, Cin = x.shape
    kh, kw = c["kh"], c["kw"]
    stride, padding = c["stride"], c["pad"]
    Ho = (H + 2 * padding - kh) // stride + 1
    Wo = (W + 2 * padding - kw) // stride + 1
    xp = jnp.pad(x, ((0, 0), (padding, padding), (padding, padding), (0, 0)))
    cols = []
    for dy in range(kh):
        for dx in range(kw):
            cols.append(xp[:, dy::stride, dx::stride, :][:, :Ho, :Wo, :])
    a = jnp.concatenate(cols, axis=-1).reshape(N * Ho * Wo, kh * kw * Cin)
    y = matmul_prepped(a, warr, c, relu=c["relu"])
    return y.reshape(N, Ho, Wo, c["n"])


def conv_prepped(x, warr, c, residual=None):
    if c["kind"] == "1x1":
        stride = c["stride"]
        if stride > 1:
            x = x[:, ::stride, ::stride, :]
        N, Ho, Wo, Cin = x.shape
        a = x.reshape(N * Ho * Wo, Cin)
        res = None if residual is None else residual.reshape(N * Ho * Wo, -1)
        y = matmul_prepped(a, warr, c, relu=c["relu"], residual=res)
        return y.reshape(N, Ho, Wo, c["n"])
    assert residual is None
    if c["kind"] == "3x3s1":
        N, H, W, _ = x.shape
        Wp = W + 2
        if 2 * Wp + 2 < _choose_tm_conv(N * (H + 2) * Wp):
            return conv3x3_s1_prepped(x, warr, c)
    return conv_im2col_prepped(x, warr, c)


# ------------------------------- max pool 3x3/2/1 ----------------------------
def maxpool_3x3_s2_p1(x):
    # TODO(synk): window gather handled by XLA strided-slice fusion; the
    # compute-heavy conv/FC GEMMs are the Pallas kernels here.
    N, H, W, C = x.shape
    Ho = (H - 1) // 2 + 1
    Wo = (W - 1) // 2 + 1
    xp = jnp.pad(x, ((0, 0), (1, 1), (1, 1), (0, 0)),
                 constant_values=-jnp.inf)
    out = None
    for dy in range(3):
        for dx in range(3):
            v = xp[:, dy::2, dx::2, :][:, :Ho, :Wo, :]
            out = v if out is None else jnp.maximum(out, v)
    return out


# ---------------- fused global-average-pool + FC (single grid step) ----------
def _gap_fc_kernel(x_ref, w_ref, b_ref, o_ref, *, inv_hw):
    feat = jnp.sum(x_ref[...].astype(jnp.float32), axis=1) * inv_hw   # (N, C)
    y = jnp.dot(feat, w_ref[...], preferred_element_type=jnp.float32)
    o_ref[...] = y + b_ref[...]


@functools.lru_cache(maxsize=None)
def _gap_fc_fn(N, HW, C, Np):
    kern = functools.partial(_gap_fc_kernel, inv_hw=1.0 / HW)
    f = pl.pallas_call(
        kern,
        out_shape=jax.ShapeDtypeStruct((N, Np), jnp.float32),
        grid_spec=pltpu.PrefetchScalarGridSpec(
            num_scalar_prefetch=0,
            grid=(1,),
            in_specs=[
                pl.BlockSpec((N, HW, C), lambda i: (0, 0, 0)),
                pl.BlockSpec((C, Np), lambda i: (0, 0)),
                pl.BlockSpec((1, Np), lambda i: (0, 0)),
            ],
            out_specs=pl.BlockSpec((N, Np), lambda i: (0, 0)),
        ),
        compiler_params=pltpu.CompilerParams(
            dimension_semantics=("arbitrary",)),
    )
    return jax.jit(f)


def gap_fc(x, fc_w_p, fc_b_p, n_out):
    N, H, W, C = x.shape
    Np = fc_w_p.shape[1]
    y = _gap_fc_fn(N, H * W, C, Np)(x.reshape(N, H * W, C), fc_w_p, fc_b_p)
    return y[:, :n_out]


# ------------------------------- params / BN fold ----------------------------
def _bn_init(cch):
    return {"gamma": jnp.ones((cch,), jnp.float32),
            "beta": jnp.zeros((cch,), jnp.float32),
            "mean": jnp.zeros((cch,), jnp.float32),
            "var": jnp.ones((cch,), jnp.float32)}


def bn_fold(bn):
    scale = bn["gamma"] * jax.lax.rsqrt(bn["var"] + BN_EPS)
    bias = bn["beta"] - bn["mean"] * scale
    return scale, bias


def _init_conv(key, kh, kw, cin, cout):
    std = (2.0 / (kh * kw * cin)) ** 0.5
    return jax.random.normal(key, (kh, kw, cin, cout), jnp.float32) * std


def init_params(key):
    # TODO(synk): torchvision pretrained weights cannot be loaded here; the
    # structure and eval-mode (frozen running-stats) BN math match resnet50.
    keys = iter(jax.random.split(key, 256))
    params = {"conv1": _init_conv(next(keys), 7, 7, 3, 64), "bn1": _bn_init(64)}
    inplanes = 64
    layers = []
    for li, (planes, nblocks) in enumerate(LAYER_CFG):
        blocks = []
        for bi in range(nblocks):
            stride = 2 if (li > 0 and bi == 0) else 1
            blk = {
                "w1": _init_conv(next(keys), 1, 1, inplanes, planes),
                "bn1": _bn_init(planes),
                "w2": _init_conv(next(keys), 3, 3, planes, planes),
                "bn2": _bn_init(planes),
                "w3": _init_conv(next(keys), 1, 1, planes, planes * 4),
                "bn3": _bn_init(planes * 4),
            }
            if stride != 1 or inplanes != planes * 4:
                blk["wds"] = _init_conv(next(keys), 1, 1, inplanes, planes * 4)
                blk["bnds"] = _bn_init(planes * 4)
            blocks.append(blk)
            inplanes = planes * 4
        layers.append(blocks)
    params["layers"] = layers
    params["fc_w"] = jax.random.normal(next(keys), (2048, 1), jnp.float32) * 0.02
    params["fc_b"] = jnp.zeros((1,), jnp.float32)
    return params


# -------------------- one-time weight preparation (hoisted) ------------------
def _prep_conv(w_hwio, bn, *, stride, padding, relu):
    kh, kw, cin, cout = w_hwio.shape
    scale, bias = bn_fold(bn)
    Np, TN = _choose_tn(cout)
    w2d = w_hwio.reshape(kh * kw * cin, cout).astype(jnp.bfloat16)
    if kh == 1 and kw == 1:
        kind, kp = "1x1", cin
    elif kh == 3 and kw == 3 and stride == 1 and padding == 1:
        kind, kp = "3x3s1", kh * kw * cin          # K kept exact (tap-major)
    else:
        kind, kp = "im2col", _round_up(kh * kw * cin, 128)
    arrays = {
        "w": _pad2d(w2d, kp, Np),
        "s": _pad2d(scale.reshape(1, -1).astype(jnp.float32), 1, Np),
        "c": _pad2d(bias.reshape(1, -1).astype(jnp.float32), 1, Np),
    }
    cfg = {"kind": kind, "n": cout, "tn": TN, "relu": relu, "stride": stride,
           "pad": padding, "kh": kh, "kw": kw}
    return arrays, cfg


def prepare_params(params):
    """Fold BN, cast to bf16 and pad every weight/scale/bias ONCE.
    Returns (weights: array pytree, cfg: static metadata mirror)."""
    weights, cfg = {}, {}
    weights["conv1"], cfg["conv1"] = _prep_conv(
        params["conv1"], params["bn1"], stride=2, padding=3, relu=True)
    wl, cl = [], []
    for li, layer in enumerate(params["layers"]):
        wbs, cbs = [], []
        for bi, blk in enumerate(layer):
            stride = 2 if (li > 0 and bi == 0) else 1
            wb, cb = {}, {}
            wb["w1"], cb["w1"] = _prep_conv(blk["w1"], blk["bn1"],
                                            stride=1, padding=0, relu=True)
            wb["w2"], cb["w2"] = _prep_conv(blk["w2"], blk["bn2"],
                                            stride=stride, padding=1, relu=True)
            wb["w3"], cb["w3"] = _prep_conv(blk["w3"], blk["bn3"],
                                            stride=1, padding=0, relu=True)
            if "wds" in blk:
                wb["wds"], cb["wds"] = _prep_conv(blk["wds"], blk["bnds"],
                                                  stride=stride, padding=0,
                                                  relu=False)
            wbs.append(wb)
            cbs.append(cb)
        wl.append(wbs)
        cl.append(cbs)
    weights["layers"], cfg["layers"] = wl, cl
    np_fc, _ = _choose_tn(1)
    weights["fc_w"] = _pad2d(params["fc_w"].astype(jnp.float32),
                             params["fc_w"].shape[0], np_fc)
    weights["fc_b"] = _pad2d(params["fc_b"].reshape(1, -1).astype(jnp.float32),
                             1, np_fc)
    return weights, cfg


# --------------------------------- forward -----------------------------------
def make_forward(cfg):
    def forward(x_nchw, weights):
        x = jnp.transpose(x_nchw, (0, 2, 3, 1)).astype(jnp.bfloat16)  # -> NHWC
        x = conv_prepped(x, weights["conv1"], cfg["conv1"])
        x = maxpool_3x3_s2_p1(x)
        # TODO(synk): w1(1x1)+3x3 and stem+maxpool kernel fusion not done yet.
        for wl, cl in zip(weights["layers"], cfg["layers"]):
            for wb, cb in zip(wl, cl):
                if "wds" in wb:
                    identity = conv_prepped(x, wb["wds"], cb["wds"])
                else:
                    identity = x
                out = conv_prepped(x, wb["w1"], cb["w1"])
                out = conv_prepped(out, wb["w2"], cb["w2"])
                # residual add + ReLU fused into this 1x1 GEMM's epilogue
                x = conv_prepped(out, wb["w3"], cb["w3"], residual=identity)
        # AdaptiveAvgPool2d(1) + flatten + Linear(2048, 1), fused in one kernel
        return gap_fc(x, weights["fc_w"], weights["fc_b"], 1)   # [N, 1]
    return jax.jit(forward)


if __name__ == "__main__":
    key = jax.random.PRNGKey(0)
    pk, xk = jax.random.split(key)
    params = init_params(pk)
    weights, cfg = prepare_params(params)
    # PyTorch-style NCHW input; 64x64 keeps every stage >= 2x2 spatially.
    x = jax.random.normal(xk, (2, 3, 64, 64), jnp.float32)
    fwd = make_forward(cfg)
    y = jax.block_until_ready(fwd(x, weights))
    assert y.shape == (2, 1)
    assert bool(jnp.all(jnp.isfinite(y)))
    print("KERNEL_OK")
</pallas_src>

<mosaic_0001>
module attributes {stable_mosaic.version = 11 : i64} {
  func.func @_gemm_kernel(%arg0: i32, %arg1: i32, %arg2: memref<256x256xbf16, #tpu.memory_space<vmem>>, %arg3: memref<256x128xbf16, #tpu.memory_space<vmem>>, %arg4: memref<1x128xf32, #tpu.memory_space<vmem>>, %arg5: memref<1x128xf32, #tpu.memory_space<vmem>>, %arg6: memref<256x128xbf16, #tpu.memory_space<vmem>>) attributes {dimension_semantics = [#tpu.dimension_semantics<parallel>, #tpu.dimension_semantics<parallel>], iteration_bounds = array<i64: 1, 8>, scalar_prefetch = 0 : i64, scratch_operands = 0 : i64, tpu.core_type = #tpu.core_type<tc>, window_params = [{transform_indices = @transform_0, window_bounds = array<i64: 256, 256>}, {transform_indices = @transform_1, window_bounds = array<i64: 256, 128>}, {transform_indices = @transform_2, window_bounds = array<i64: 1, 128>}, {transform_indices = @transform_3, window_bounds = array<i64: 1, 128>}, {transform_indices = @transform_4, window_bounds = array<i64: 256, 128>}]} {
    %c0 = arith.constant 0 : index
    %c0_0 = arith.constant 0 : index
    %0 = vector.load %arg2[%c0, %c0_0] : memref<256x256xbf16, #tpu.memory_space<vmem>>, vector<256x256xbf16>
    %c0_1 = arith.constant 0 : index
    %c0_2 = arith.constant 0 : index
    %1 = vector.load %arg3[%c0_1, %c0_2] : memref<256x128xbf16, #tpu.memory_space<vmem>>, vector<256x128xbf16>
    %cst = arith.constant dense<0.000000e+00> : vector<256x128xf32>
    %2 = tpu.matmul %0, %1, %cst {dimension_numbers = #tpu.dot_dimension_numbers<[1], [0], [0], [1], [0, 0, 1, 1], [], []>} : vector<256x256xbf16>, vector<256x128xbf16>, vector<256x128xf32> -> vector<256x128xf32>
    %c0_3 = arith.constant 0 : index
    %c0_4 = arith.constant 0 : index
    %3 = vector.load %arg4[%c0_3, %c0_4] : memref<1x128xf32, #tpu.memory_space<vmem>>, vector<1x128xf32>
    %4 = vector.broadcast %3 : vector<1x128xf32> to vector<256x128xf32>
    %5 = arith.mulf %2, %4 : vector<256x128xf32>
    %c0_5 = arith.constant 0 : index
    %c0_6 = arith.constant 0 : index
    %6 = vector.load %arg5[%c0_5, %c0_6] : memref<1x128xf32, #tpu.memory_space<vmem>>, vector<1x128xf32>
    %7 = vector.broadcast %6 : vector<1x128xf32> to vector<256x128xf32>
    %8 = arith.addf %5, %7 : vector<256x128xf32>
    %cst_7 = arith.constant 0.000000e+00 : f32
    %9 = vector.broadcast %cst_7 : f32 to vector<256x128xf32>
    %10 = arith.maximumf %8, %9 : vector<256x128xf32>
    %11 = arith.truncf %10 : vector<256x128xf32> to vector<256x128xbf16>
    %c0_8 = arith.constant 0 : index
    %c0_9 = arith.constant 0 : index
    %12 = vector.load %arg6[%c0_8, %c0_9] : memref<256x128xbf16, #tpu.memory_space<vmem>>, vector<256x128xbf16>
    tpu.vector_store %arg6[%c0_8, %c0_9], %11 {strides = array<i32>} : memref<256x128xbf16, #tpu.memory_space<vmem>>, vector<256x128xbf16>,
    return
  }
  func.func @transform_0(%arg0: i32, %arg1: i32) -> (i32, i32) {
    %c0_i32 = arith.constant 0 : i32
    %c0_i32_0 = arith.constant 0 : i32
    return %arg1, %c0_i32 : i32, i32
  }
  func.func @transform_1(%arg0: i32, %arg1: i32) -> (i32, i32) {
    %c0_i32 = arith.constant 0 : i32
    %c0_i32_0 = arith.constant 0 : i32
    return %c0_i32, %arg0 : i32, i32
  }
  func.func @transform_2(%arg0: i32, %arg1: i32) -> (i32, i32) {
    %c0_i32 = arith.constant 0 : i32
    %c0_i32_0 = arith.constant 0 : i32
    return %c0_i32, %arg0 : i32, i32
  }
  func.func @transform_3(%arg0: i32, %arg1: i32) -> (i32, i32) {
    %c0_i32 = arith.constant 0 : i32
    %c0_i32_0 = arith.constant 0 : i32
    return %c0_i32, %arg0 : i32, i32
  }
  func.func @transform_4(%arg0: i32, %arg1: i32) -> (i32, i32) {
    %c0_i32 = arith.constant 0 : i32
    return %arg1, %arg0 : i32, i32
  }
}

</mosaic_0001>

<bundles_post_ra>
// kernel: tpu_custom_call.1
= control target key start
LH: loop header
LB: loop body
LE: loop exit
PB: predicated region body
PF: predicated region fallthrough
CT: control target
= control target key end

     0   :  { %s2153_s0 = inlined_call_operand.hbm [shape: bf16[2048,256], index: 0, kind: input, shape index: {}]   ;;  %s2154_s1 = inlined_call_operand.hbm [shape: bf16[256,128], index: 1, kind: input, shape index: {}]   ;;  %s2155_s2 = inlined_call_operand.vmem [shape: f32[1,128], index: 2, kind: input, shape index: {}]   ;;  %s2156_s3 = inlined_call_operand.vmem [shape: f32[1,128], index: 3, kind: input, shape index: {}]   ;;  %s2157_s4 = inlined_call_operand.hbm [shape: bf16[2048,128], index: 4, kind: output, shape index: {}]  }
   0x1   :  { %2159 = sst [smem:[#allocation11_spill]] %s2154_s1 }
   0x2   :  { %9 = vsyncpa [#allocation3], 0 }
   0x3   :  { %11 = vsyncpa [#allocation3 + $0x1], 0 }
   0x4   :  { %12 = vsyncpa [#allocation6], 0 }
   0x5   :  { %13 = vsyncpa [#allocation4], 0 }
   0x6   :  { %15 = vsyncpa [#allocation4 + $0x1], 0  ;;  %s1846_s15 = smov 0   ;;  %s1848_s16 = smov 0  }
   0x7   :  { %s1850_s17 = smov 0   ;;  %s1852_s18 = smov 0  }
   0x8   :  { %s1854_s19 = smov 0   ;;  %s1856_s20 = smov 0  }
   0x9 LB: > { %s1169_s21 = sadd.s32 4294967295, %s1810_s20   ;;  %s1170_s22 = sadd.s32 4294967294, %s1810_s20   ;;  %s1810_s20 = sphi %s1856_s20, %s21_s20   ;;  %s1806_s19 = sphi %s1854_s19, %s2176_s19   ;;  %s1802_s18 = sphi %s1852_s18, %s2175_s18   ;;  %s1798_s17 = sphi %s1850_s17, %s2174_s17   ;;  %s1794_s16 = sphi %s1848_s16, %s2173_s16   ;;  %s1790_s15 = sphi %s1846_s15, %s2172_s15  }
   0xa   : > { %p53_p0 = scmp.ne.s32.totalorder %s1794_s16, %s1790_s15  ;;  %p1880_p1 = scmp.eq.s32.totalorder %s1169_s21, 0 }
   0xb   : > { %p1884_p2 = scmp.eq.s32.totalorder %s1169_s21, 7  ;;  %p163_p3 = scmp.eq.s32.totalorder %s1170_s22, 7 }
   0xc   : > { %p1890_p4 = por %p1880_p1, %p53_p0  ;;  %p1171_p5 = scmp.ge.s32.totalorder %s1810_s20, 1 }
   0xd   : > { %p1895_p6 = por %p163_p3, %p53_p0  ;;  %p170_p7 = scmp.lt.s32.totalorder %s1810_s20, 9 }
   0xe   : > { %s1812_s28 = smov [#allocation5]   ;;  %s30_s5 = sadd.s32 1, %s1806_s19 }
   0xf   : > { %s2163_s26 = scalar_select %p1895_p6, 1, 0 }
  0x10   : > { %p1900_p8 = pnand %p1171_p5, %p170_p7  ;;  %s184_s29 = sshll.u32 %s1812_s28, 4  ;;  %s185_s29 = int_to_ptr.vmem [resolvable:$true] %s184_s29 }
  0x11   : > { %s1683_s6 = scalar_lea.vmem %s185_s29, 2048  ;;  %p1691_p3 = scmp.lt.s32.totalorder %s185_s29, %s185_s29 }
  0x12   : > { %p1537_p9 = pneg %p1900_p8  ;;  %p1684_p12 = scmp.ne.s32.totalorder %s185_s29, %s1683_s6 }
  0x13   : > { %p1692_p5 = scmp.lt.s32.totalorder %s1683_s6, %s1683_s6 }
  0x14   : > { %p1908_p10 = pnand %p1537_p9, %p1880_p1 }
  0x15   : > { %p1693_p7 = por %p1692_p5, %p1691_p3 }
  0x16   : > { %p1674_p11 = pneg %p1908_p10 }
  0x18   : > { %p1686_p13 = pnand %p1684_p12, %p1674_p11 }
  0x1a   : > { %p1687_p0 = pneg %p1686_p13 }
  0x1c   : > { %p1694_p6 = pnand %p1693_p7, %p1687_p0 }
  0x1e   : > { %1697 = shalt.err (!%p1694_p6)
}
  0x1f   : > { %s1813_s7 = smov 64   ;;  %s1814_s8 = smov 4  }
  0x20   : > { %s2166_s1 = sld [smem:[#allocation11_spill]]  ;;  %p31_p9 = scmp.ge.s32.totalorder %s30_s5, 8 }
  0x21   : > { %s40_s11 = sadd.s32 1, %s1798_s17  ;;  %p47_p6 = scmp.ne.s32.totalorder %s1798_s17, %s1794_s16 }
  0x22   : > { %p48_p11 = scmp.eq.s32.totalorder %s1810_s20, 0  ;;  %s2178_s5 = smov (%p31_p9, %s30_s5), 0 }
  0x23   : > { %p1932_p13 = por %p1884_p2, %p47_p6  ;;  %s37_s14 = ssub.s32 %s1806_s19, %s2178_s5 }
  0x24   : > { %p1926_p12 = por %p48_p11, %p47_p6  ;;  %p1550_p0 = scmp.lt.s32.totalorder %s1810_s20, 8 }
  0x25   : > { %s2168_s13 = scalar_select %p1932_p13, 1, 0 }
  0x26   : > { %1540 = dma.hbm_to_vmem [thread:$0]  (!%p1908_p10), %s2166_s1, 2048, %s185_s29, [#allocation6], %s1813_s7, %s1813_s7, %s1814_s8  }
  0x27   : > { %p38_p10 = scmp.eq.s32.totalorder %s37_s14, 0  ;;  %s210_s21 = sand.u32 1, %s1798_s17  }
  0x28   : > { %s1176_s22 = sshll.u32 %s210_s21, 8  ;;  %s1272_s29 = sshll.u32 %s1806_s19, 12 }
  0x29   : > { %s1941_s28 = scalar_select %p38_p10, %s1798_s17, %s40_s11  }
  0x2a   : > { %s221_s7 = scalar_lea.hbm %s2153_s0, %s1272_s29  ;;  %s214_s8 = scalar_lea.vmem [#allocation2], %s1176_s22 }
  0x2b   : > { %s222_s9 = sshll.u32 %s214_s8, 4  ;;  %p1949_p2 = pnand %p1550_p0, %p1926_p12  ;;  %s223_s9 = int_to_ptr.vmem [resolvable:$true] %s222_s9 }
  0x2c   : > { %s211_s10 = scalar_lea.sflag [#allocation3], %s210_s21  ;;  %s1711_s14 = scalar_lea.vmem %s223_s9, 4096 }
  0x2d   : > { %p1700_p3 = pneg %p1949_p2  ;;  %p1712_p5 = scmp.ne.s32.totalorder %s223_s9, %s1711_s14 }
  0x2e   : > { %s1815_s11 = smov [#allocation2]  }
  0x2f   : > { %p1714_p7 = pnand %p1712_p5, %p1700_p3  ;;  %s1716_s1 = sshll.u32 %s1815_s11, 4  ;;  %s1717_s1 = int_to_ptr.vmem [resolvable:$false] %s1716_s1 }
  0x30   : > { %s1718_s29 = scalar_lea.vmem %s1717_s1, 8192  ;;  %p1719_p6 = scmp.lt.s32.totalorder %s223_s9, %s1717_s1 }
  0x31   : > { %p1715_p9 = pneg %p1714_p7  ;;  %p1720_p11 = scmp.lt.s32.totalorder %s1718_s29, %s1711_s14 }
  0x33   : > { %p1721_p10 = por %p1720_p11, %p1719_p6 }
  0x35   : > { %p1722_p13 = pnand %p1721_p10, %p1715_p9 }
  0x37   : > { %1725 = shalt.err (!%p1722_p13)
}
  0x38   : > { %s1816_s12 = smov 128   ;;  %s1817_s22 = smov 8  }
  0x39   : > { %1544 = dma.hbm_to_vmem [thread:$0]  (!%p1949_p2), %s221_s7, 4096, %s223_s9, %s211_s10, %s1816_s12, %s1816_s12, %s1817_s22  }
  0x3a   : > { %234 = sbr.rel (%p1900_p8) target bundleno = 378 (0x17a), region = 36  ;;  %s1960_s21 = sand.u32 (!%p1900_p8), 1, %s1794_s16  }
  0x3b   : > { %s1181_s30 = sshll.u32 (!%p1900_p8), %s1960_s21, 8  ;;  %s237_s1 = scalar_lea.sflag (!%p1900_p8), [#allocation3], %s1960_s21 }
  0x3c   : > { %s1964_s6 = scalar_lea.vmem (!%p1900_p8), [#allocation2], %s1181_s30 }
  0x3f   : > { %1777 = dma.done.wait (%p1890_p4), %s237_s1, 4096  }
  0x40   : > { %1779 = vsyncadd (%p1890_p4), %s237_s1, 4294963200 }
  0x41   : > { %1781 = dma.done.wait (%p1880_p1), [#allocation6], 2048  }
  0x42   : > { %1783 = vsyncadd (%p1880_p1), [#allocation6], 4294965248  ;;  %v1608_v0 = vld [vmem:[#allocation5 + $0x78] sm:$0xff]   ;;  %v1610_v2 = vld [vmem:[#allocation5 + $0x70] sm:$0xff]   ;;  %s1183_s8 = sshll.u32 %s1960_s21, 7  ;;  %s1305_s24 = sshll.u32 %s1802_s18, 11 }
  0x43   : > { %v1609_v1 = vld [vmem:[#allocation5 + $0x38] sm:$0xff]   ;;  %1401 = vmatprep.subr.bf16.mxu0 %v1608_v0  ;;  %1513 = vmatprep.subr.bf16.mxu1 %v1608_v0  ;;  %v1611_v3 = vld [vmem:[#allocation5 + $0x30] sm:$0xff]   ;;  %v1612_v4 = vld [vmem:[#allocation5 + $0x68] sm:$0xff]   ;;  %s2027_s9 = scalar_lea.vmem [#allocation7], %s1183_s8  ;;  %s2102_s29 = scalar_lea.hbm %s2157_s4, %s1305_s24 }
  0x44   : > { %1402 = vmatpush3.bf16.msra.mxu0 %v1609_v1  ;;  %1521 = vmatpush3.bf16.msra.mxu1 %v1609_v1  ;;  %v1613_v5 = vld [vmem:[#allocation5 + $0x28] sm:$0xff]   ;;  %v1614_v6 = vld [vmem:[#allocation5 + $0x60] sm:$0xff]   ;;  %v1616_v8 = vld [vmem:[#allocation5 + $0x58] sm:$0xff]   ;;  %s1050_s10 = sshll.u32 %s2027_s9, 4  ;;  %s1036_s18 = scalar_lea.sflag [#allocation4], %s1960_s21  ;;  %s2104_s10 = int_to_ptr.vmem [resolvable:$true] %s1050_s10 }
  0x45   : > { %1403 = vmatprep.subr.bf16.mxu0 %v1610_v2  ;;  %1514 = vmatprep.subr.bf16.mxu1 %v1610_v2  ;;  %v1615_v7 = vld [vmem:[#allocation5 + $0x20] sm:$0xff]   ;;  %v1617_v9 = vld [vmem:[#allocation5 + $0x18] sm:$0xff]   ;;  %v1618_v10 = vld [vmem:[#allocation5 + $0x50] sm:$0xff]   ;;  %s1726_s12 = scalar_lea.vmem %s2104_s10, 2048  ;;  %p2170_p4 = scmp.ne.s32.totalorder %s2168_s13, 0 }
  0x46   : > { %v1626_v11 = vld [vmem:[%s1964_s6 + $0x4] ss:$8 sps:$4 sm:$0xff]   ;;  %v1619_v13 = vld [vmem:[#allocation5 + $0x10] sm:$0xff]   ;;  %v1624_v18 = vld [vmem:[%s1964_s6] ss:$8 sps:$4 sm:$0xff]   ;;  %p1727_p1 = scmp.ne.s32.totalorder %s2104_s10, %s1726_s12  ;;  %s1818_s22 = smov [#allocation7]  }
  0x47   : > { %v1629_v12 = vld [vmem:[%s1964_s6 + $0x84] ss:$8 sps:$4 sm:$0xff]   ;;  %636 = vmatprep.mubr.bf16.mxu0 %v1626_v11  ;;  %v1627_v19 = vld [vmem:[%s1964_s6 + $0x80] ss:$8 sps:$4 sm:$0xff]   ;;  %v1630_v20 = vld [vmem:[%s1964_s6 + $0x14] ss:$8 sps:$4 sm:$0xff]  }
  0x48   : > { %1404 = vmatpush3.bf16.msra.mxu0 %v1611_v3  ;;  %1522 = vmatpush3.bf16.msra.mxu1 %v1611_v3  ;;  %v1620_v14 = vld [vmem:[#allocation5 + $0x48] sm:$0xff]   ;;  %v1622_v16 = vld [vmem:[#allocation5 + $0x40] sm:$0xff]   ;;  %v1632_v21 = vld [vmem:[%s1964_s6 + $0x94] ss:$8 sps:$4 sm:$0xff]   ;;  %p1728_p8 = pnand %p1727_p1, %p2170_p4  ;;  %s1730_s30 = sshll.u32 %s1818_s22, 4  ;;  %s1731_s30 = int_to_ptr.vmem [resolvable:$false] %s1730_s30 }
  0x49   : > { %1405 = vmatprep.subr.bf16.mxu0 %v1612_v4  ;;  %1515 = vmatprep.subr.bf16.mxu1 %v1612_v4  ;;  %v1621_v15 = vld [vmem:[#allocation5 + $0x8] sm:$0xff]   ;;  %v1623_v17 = vld [vmem:[#allocation5] sm:$0xff]   ;;  %v1634_v22 = vld [vmem:[%s1964_s6 + $0x10] ss:$8 sps:$4 sm:$0xff]   ;;  %s1732_s1 = scalar_lea.vmem %s1731_s30, 4096  ;;  %p1733_p13 = scmp.lt.s32.totalorder %s2104_s10, %s1731_s30 }
  0x4a   : > { %700 = vmatprep.mubr.bf16.mxu1 %v1629_v12  ;;  %v1635_v23 = vld [vmem:[%s1964_s6 + $0x90] ss:$8 sps:$4 sm:$0xff]   ;;  %v1636_v24 = vld [vmem:[%s1964_s6 + $0x24] ss:$8 sps:$4 sm:$0xff]   ;;  %v1640_v26 = vld [vmem:[%s1964_s6 + $0x20] ss:$8 sps:$4 sm:$0xff]   ;;  %p1729_p12 = pneg %p1728_p8  ;;  %p1734_p0 = scmp.lt.s32.totalorder %s1732_s1, %s1726_s12 }
  0x4b   : > { %v1638_v25 = vld [vmem:[%s1964_s6 + $0xa4] ss:$8 sps:$4 sm:$0xff]   ;;  %v1641_v27 = vld [vmem:[%s1964_s6 + $0xa0] ss:$8 sps:$4 sm:$0xff]   ;;  %v1642_v28 = vld [vmem:[%s1964_s6 + $0x34] ss:$8 sps:$4 sm:$0xff]  }
  0x4c   : > { %1406 = vmatpush3.bf16.msra.mxu0 %v1613_v5  ;;  %1523 = vmatpush3.bf16.msra.mxu1 %v1613_v5  ;;  %v1644_v29 = vld [vmem:[%s1964_s6 + $0xb4] ss:$8 sps:$4 sm:$0xff]   ;;  %v1646_v30 = vld [vmem:[%s1964_s6 + $0x30] ss:$8 sps:$4 sm:$0xff]   ;;  %v1648_v32 = vld [vmem:[%s1964_s6 + $0x44] ss:$8 sps:$4 sm:$0xff]   ;;  %p1735_p2 = por %p1734_p0, %p1733_p13 }
  0x4d   : > { %1407 = vmatprep.subr.bf16.mxu0 %v1614_v6  ;;  %1516 = vmatprep.subr.bf16.mxu1 %v1614_v6  ;;  %v1647_v31 = vld [vmem:[%s1964_s6 + $0xb0] ss:$8 sps:$4 sm:$0xff]   ;;  %v1650_v33 = vld [vmem:[%s1964_s6 + $0xc4] ss:$8 sps:$4 sm:$0xff]   ;;  %v1652_v34 = vld [vmem:[%s1964_s6 + $0x40] ss:$8 sps:$4 sm:$0xff]  }
  0x4e   : > { %v1653_v35 = vld [vmem:[%s1964_s6 + $0xc0] ss:$8 sps:$4 sm:$0xff]   ;;  %v1654_v36 = vld [vmem:[%s1964_s6 + $0x54] ss:$8 sps:$4 sm:$0xff]   ;;  %v1658_v38 = vld [vmem:[%s1964_s6 + $0x50] ss:$8 sps:$4 sm:$0xff]   ;;  %p1736_p3 = pnand %p1735_p2, %p1729_p12 }
  0x4f   : > { %v1656_v37 = vld [vmem:[%s1964_s6 + $0xd4] ss:$8 sps:$4 sm:$0xff]   ;;  %v1659_v39 = vld [vmem:[%s1964_s6 + $0xd0] ss:$8 sps:$4 sm:$0xff]   ;;  %v1660_v40 = vld [vmem:[%s1964_s6 + $0x64] ss:$8 sps:$4 sm:$0xff]  }
  0x50   : > { %1408 = vmatpush3.bf16.msra.mxu0 %v1615_v7  ;;  %1524 = vmatpush3.bf16.msra.mxu1 %v1615_v7  ;;  %v1662_v41 = vld [vmem:[%s1964_s6 + $0xe4] ss:$8 sps:$4 sm:$0xff]   ;;  %v1664_v42 = vld [vmem:[%s1964_s6 + $0x60] ss:$8 sps:$4 sm:$0xff]   ;;  %v1666_v44 = vld [vmem:[%s1964_s6 + $0x74] ss:$8 sps:$4 sm:$0xff]  }
  0x51   : > { %1409 = vmatprep.subr.bf16.mxu0 %v1616_v8  ;;  %1517 = vmatprep.subr.bf16.mxu1 %v1616_v8  ;;  %v1665_v43 = vld [vmem:[%s1964_s6 + $0xe0] ss:$8 sps:$4 sm:$0xff]   ;;  %v1668_v45 = vld [vmem:[%s1964_s6 + $0xf4] ss:$8 sps:$4 sm:$0xff]   ;;  %v1670_v46 = vld [vmem:[%s1964_s6 + $0x70] ss:$8 sps:$4 sm:$0xff]  }
  0x52   : > { %v1671_v47 = vld [vmem:[%s1964_s6 + $0xf0] ss:$8 sps:$4 sm:$0xff]   ;;  %v2009_v51 = vld [vmem:[%s2155_s2] ss:$0 sm:$0xff] }
  0x53   : > { %v2016_v59 = vld [vmem:[%s2156_s3] ss:$0 sm:$0xff] }
  0x54   : > { %1410 = vmatpush3.bf16.msra.mxu0 %v1617_v9  ;;  %1525 = vmatpush3.bf16.msra.mxu1 %v1617_v9 }
  0x55   : > { %1411 = vmatprep.subr.bf16.mxu0 %v1618_v10  ;;  %1518 = vmatprep.subr.bf16.mxu1 %v1618_v10 }
  0x58   : > { %1412 = vmatpush3.bf16.msra.mxu0 %v1619_v13  ;;  %1526 = vmatpush3.bf16.msra.mxu1 %v1619_v13 }
  0x59   : > { %1413 = vmatprep.subr.bf16.mxu0 %v1620_v14  ;;  %1519 = vmatprep.subr.bf16.mxu1 %v1620_v14 }
  0x5c   : > { %1414 = vmatpush3.bf16.msra.mxu0 %v1621_v15  ;;  %1527 = vmatpush3.bf16.msra.mxu1 %v1621_v15 }
  0x5d   : > { %1415 = vmatprep.subr.bf16.mxu0 %v1622_v16  ;;  %1520 = vmatprep.subr.bf16.mxu1 %v1622_v16 }
  0x60   : > { %1416 = vmatpush3.bf16.msra.mxu0 %v1623_v17  ;;  %1528 = vmatpush3.bf16.msra.mxu1 %v1623_v17 }
  0x63   : > { %637 = vmatmul.mubr.bf16.vlgmr.msra.gmra.mxu0 %v1624_v18  ;;  %701 = vmatmul.mubr.bf16.vlgmr.msra.gmra.mxu1 %v1627_v19 }
  0x64   : > { %644 = vmatprep.mubr.bf16.mxu0 %v1630_v20  ;;  %708 = vmatprep.mubr.bf16.mxu1 %v1632_v21 }
  0x6b   : > { %645 = vmatmul.mubr.bf16.gmra.mxu0 %v1634_v22  ;;  %709 = vmatmul.mubr.bf16.gmra.mxu1 %v1635_v23 }
  0x6c   : > { %652 = vmatprep.mubr.bf16.mxu0 %v1636_v24  ;;  %716 = vmatprep.mubr.bf16.mxu1 %v1638_v25 }
  0x73   : > { %653 = vmatmul.mubr.bf16.gmra.mxu0 %v1640_v26  ;;  %717 = vmatmul.mubr.bf16.gmra.mxu1 %v1641_v27 }
  0x74   : > { %660 = vmatprep.mubr.bf16.mxu0 %v1642_v28  ;;  %724 = vmatprep.mubr.bf16.mxu1 %v1644_v29 }
  0x7b   : > { %661 = vmatmul.mubr.bf16.gmra.mxu0 %v1646_v30  ;;  %725 = vmatmul.mubr.bf16.gmra.mxu1 %v1647_v31 }
  0x7c   : > { %668 = vmatprep.mubr.bf16.mxu0 %v1648_v32  ;;  %732 = vmatprep.mubr.bf16.mxu1 %v1650_v33 }
  0x83   : > { %669 = vmatmul.mubr.bf16.gmra.mxu0 %v1652_v34  ;;  %733 = vmatmul.mubr.bf16.gmra.mxu1 %v1653_v35 }
  0x84   : > { %676 = vmatprep.mubr.bf16.mxu0 %v1654_v36  ;;  %740 = vmatprep.mubr.bf16.mxu1 %v1656_v37 }
  0x8b   : > { %677 = vmatmul.mubr.bf16.gmra.mxu0 %v1658_v38  ;;  %741 = vmatmul.mubr.bf16.gmra.mxu1 %v1659_v39 }
  0x8c   : > { %684 = vmatprep.mubr.bf16.mxu0 %v1660_v40  ;;  %748 = vmatprep.mubr.bf16.mxu1 %v1662_v41 }
  0x93   : > { %685 = vmatmul.mubr.bf16.gmra.mxu0 %v1664_v42  ;;  %749 = vmatmul.mubr.bf16.gmra.mxu1 %v1665_v43 }
  0x94   : > { %692 = vmatprep.mubr.bf16.mxu0 %v1666_v44  ;;  %756 = vmatprep.mubr.bf16.mxu1 %v1668_v45 }
  0x9b   : > { %693 = vmatmul.mubr.bf16.gmra.mxu0 %v1670_v46  ;;  %757 = vmatmul.mubr.bf16.gmra.mxu1 %v1671_v47 }
 0x123   : > { %v1417_v48 = vpop.f32.mrf.mxu0  ;;  %v1465_v49 = vpop.f32.mrf.mxu1 }
 0x125   : > { %v1418_v50 = vpop.f32.mrf.mxu0  ;;  %v1466_v52 = vpop.f32.mrf.mxu1 }
 0x126   : > { %v1419_v53 = vadd.f32 %v1418_v50, %v1417_v48  ;;  %v1467_v54 = vadd.f32 %v1466_v52, %v1465_v49 }
 0x127   : > { %v1420_v55 = vpop.f32.mrf.mxu0  ;;  %v1468_v56 = vpop.f32.mrf.mxu1 }
 0x128   : > { %v772_v57 = vmul.f32 %v1419_v53, %v2009_v51  ;;  %v788_v58 = vmul.f32 %v1467_v54, %v2009_v51 }
 0x129   : > { %v1421_v60 = vpop.f32.mrf.mxu0  ;;  %v1469_v61 = vpop.f32.mrf.mxu1 }
 0x12a   : > { %v1422_v62 = vadd.f32 %v1421_v60, %v1420_v55  ;;  %v1470_v63 = vadd.f32 %v1469_v61, %v1468_v56  ;;  %v811_v2 = vadd.f32 %v2016_v59, %v772_v57  ;;  %v827_v3 = vadd.f32 %v2016_v59, %v788_v58 }
 0x12b   : > { %v1423_v0 = vpop.f32.mrf.mxu0  ;;  %v1471_v1 = vpop.f32.mrf.mxu1 }
 0x12c   : > { %v773_v4 = vmul.f32 %v1422_v62, %v2009_v51  ;;  %v789_v5 = vmul.f32 %v1470_v63, %v2009_v51  ;;  %v843_v14 = vmax.f32 %v811_v2, 0.0  ;;  %v859_v15 = vmax.f32 %v827_v3, 0.0 }
 0x12d   : > { %v1424_v6 = vpop.f32.mrf.mxu0  ;;  %v1472_v7 = vpop.f32.mrf.mxu1 }
 0x12e   : > { %v812_v8 = vadd.f32 %v2016_v59, %v773_v4  ;;  %v828_v9 = vadd.f32 %v2016_v59, %v789_v5  ;;  %v1425_v10 = vadd.f32 %v1424_v6, %v1423_v0  ;;  %v1473_v11 = vadd.f32 %v1472_v7, %v1471_v1 }
 0x12f   : > { %v1426_v12 = vpop.f32.mrf.mxu0  ;;  %v1474_v13 = vpop.f32.mrf.mxu1 }
 0x130   : > { %v844_v16 = vmax.f32 %v812_v8, 0.0  ;;  %v860_v17 = vmax.f32 %v828_v9, 0.0  ;;  %v774_v18 = vmul.f32 %v1425_v10, %v2009_v51  ;;  %v790_v19 = vmul.f32 %v1473_v11, %v2009_v51 }
 0x131   : > { %v1427_v20 = vpop.f32.mrf.mxu0  ;;  %v1475_v21 = vpop.f32.mrf.mxu1 }
 0x132   : > { %v1309_v22 = vpack.c.bf16 %v844_v16, %v843_v14  ;;  %v1349_v23 = vpack.c.bf16 %v860_v17, %v859_v15  ;;  %v1428_v24 = vadd.f32 %v1427_v20, %v1426_v12  ;;  %v1476_v25 = vadd.f32 %v1475_v21, %v1474_v13 }
 0x133   : > { %v1429_v26 = vpop.f32.mrf.mxu0  ;;  %v1477_v27 = vpop.f32.mrf.mxu1  ;;  %v813_v28 = vadd.f32 %v2016_v59, %v774_v18  ;;  %v829_v29 = vadd.f32 %v2016_v59, %v790_v19 }
 0x134   : > { %1310 = vst [vmem:[%s2027_s9] sm:$0xff] %v1309_v22   ;;  %1393 = vst [vmem:[%s2027_s9 + $0x40] sm:$0xff] %v1349_v23   ;;  %v775_v30 = vmul.f32 %v1428_v24, %v2009_v51  ;;  %v791_v31 = vmul.f32 %v1476_v25, %v2009_v51 }
 0x135   : > { %v1430_v32 = vpop.f32.mrf.mxu0  ;;  %v1478_v33 = vpop.f32.mrf.mxu1  ;;  %v845_v42 = vmax.f32 %v813_v28, 0.0  ;;  %v861_v43 = vmax.f32 %v829_v29, 0.0 }
 0x136   : > { %v1431_v34 = vadd.f32 %v1430_v32, %v1429_v26  ;;  %v1479_v35 = vadd.f32 %v1478_v33, %v1477_v27  ;;  %v814_v36 = vadd.f32 %v2016_v59, %v775_v30  ;;  %v830_v37 = vadd.f32 %v2016_v59, %v791_v31 }
 0x137   : > { %v1432_v38 = vpop.f32.mrf.mxu0  ;;  %v1480_v39 = vpop.f32.mrf.mxu1 }
 0x138   : > { %v776_v40 = vmul.f32 %v1431_v34, %v2009_v51  ;;  %v792_v41 = vmul.f32 %v1479_v35, %v2009_v51  ;;  %v846_v44 = vmax.f32 %v814_v36, 0.0  ;;  %v862_v45 = vmax.f32 %v830_v37, 0.0 }
 0x139   : > { %v1433_v46 = vpop.f32.mrf.mxu0  ;;  %v1481_v47 = vpop.f32.mrf.mxu1 }
 0x13a   : > { %v1434_v48 = vadd.f32 %v1433_v46, %v1432_v38  ;;  %v1482_v49 = vadd.f32 %v1481_v47, %v1480_v39  ;;  %v1314_v50 = vpack.c.bf16 %v846_v44, %v845_v42  ;;  %v1354_v52 = vpack.c.bf16 %v862_v45, %v861_v43 }
 0x13b   : > { %v1435_v53 = vpop.f32.mrf.mxu0  ;;  %v1483_v54 = vpop.f32.mrf.mxu1  ;;  %v815_v55 = vadd.f32 %v2016_v59, %v776_v40  ;;  %v831_v56 = vadd.f32 %v2016_v59, %v792_v41 }
 0x13c   : > { %v777_v57 = vmul.f32 %v1434_v48, %v2009_v51  ;;  %v793_v58 = vmul.f32 %v1482_v49, %v2009_v51  ;;  %1386 = vst [vmem:[%s2027_s9 + $0x8] sm:$0xff] %v1314_v50   ;;  %1394 = vst [vmem:[%s2027_s9 + $0x48] sm:$0xff] %v1354_v52  }
 0x13d   : > { %v1436_v60 = vpop.f32.mrf.mxu0  ;;  %v1484_v61 = vpop.f32.mrf.mxu1  ;;  %v847_v4 = vmax.f32 %v815_v55, 0.0  ;;  %v863_v5 = vmax.f32 %v831_v56, 0.0 }
 0x13e   : > { %v816_v62 = vadd.f32 %v2016_v59, %v777_v57  ;;  %v832_v63 = vadd.f32 %v2016_v59, %v793_v58  ;;  %v1437_v0 = vadd.f32 %v1436_v60, %v1435_v53  ;;  %v1485_v1 = vadd.f32 %v1484_v61, %v1483_v54 }
 0x13f   : > { %v1438_v2 = vpop.f32.mrf.mxu0  ;;  %v1486_v3 = vpop.f32.mrf.mxu1 }
 0x140   : > { %v848_v6 = vmax.f32 %v816_v62, 0.0  ;;  %v864_v7 = vmax.f32 %v832_v63, 0.0  ;;  %v778_v8 = vmul.f32 %v1437_v0, %v2009_v51  ;;  %v794_v9 = vmul.f32 %v1485_v1, %v2009_v51 }
 0x141   : > { %v1439_v10 = vpop.f32.mrf.mxu0  ;;  %v1487_v11 = vpop.f32.mrf.mxu1 }
 0x142   : > { %v1319_v12 = vpack.c.bf16 %v848_v6, %v847_v4  ;;  %v1359_v13 = vpack.c.bf16 %v864_v7, %v863_v5  ;;  %v1440_v14 = vadd.f32 %v1439_v10, %v1438_v2  ;;  %v1488_v15 = vadd.f32 %v1487_v11, %v1486_v3 }
 0x143   : > { %v1441_v16 = vpop.f32.mrf.mxu0  ;;  %v1489_v17 = vpop.f32.mrf.mxu1  ;;  %v817_v18 = vadd.f32 %v2016_v59, %v778_v8  ;;  %v833_v19 = vadd.f32 %v2016_v59, %v794_v9 }
 0x144   : > { %1387 = vst [vmem:[%s2027_s9 + $0x10] sm:$0xff] %v1319_v12   ;;  %1395 = vst [vmem:[%s2027_s9 + $0x50] sm:$0xff] %v1359_v13   ;;  %v779_v20 = vmul.f32 %v1440_v14, %v2009_v51  ;;  %v795_v21 = vmul.f32 %v1488_v15, %v2009_v51 }
 0x145   : > { %v1442_v22 = vpop.f32.mrf.mxu0  ;;  %v1490_v23 = vpop.f32.mrf.mxu1  ;;  %v849_v32 = vmax.f32 %v817_v18, 0.0  ;;  %v865_v33 = vmax.f32 %v833_v19, 0.0 }
 0x146   : > { %v1443_v24 = vadd.f32 %v1442_v22, %v1441_v16  ;;  %v1491_v25 = vadd.f32 %v1490_v23, %v1489_v17  ;;  %v818_v26 = vadd.f32 %v2016_v59, %v779_v20  ;;  %v834_v27 = vadd.f32 %v2016_v59, %v795_v21 }
 0x147   : > { %v1444_v28 = vpop.f32.mrf.mxu0  ;;  %v1492_v29 = vpop.f32.mrf.mxu1 }
 0x148   : > { %v780_v30 = vmul.f32 %v1443_v24, %v2009_v51  ;;  %v796_v31 = vmul.f32 %v1491_v25, %v2009_v51  ;;  %v850_v34 = vmax.f32 %v818_v26, 0.0  ;;  %v866_v35 = vmax.f32 %v834_v27, 0.0 }
 0x149   : > { %v1445_v36 = vpop.f32.mrf.mxu0  ;;  %v1493_v37 = vpop.f32.mrf.mxu1 }
 0x14a   : > { %v1446_v38 = vadd.f32 %v1445_v36, %v1444_v28  ;;  %v1494_v39 = vadd.f32 %v1493_v37, %v1492_v29  ;;  %v1324_v40 = vpack.c.bf16 %v850_v34, %v849_v32  ;;  %v1364_v41 = vpack.c.bf16 %v866_v35, %v865_v33 }
 0x14b   : > { %v1447_v42 = vpop.f32.mrf.mxu0  ;;  %v1495_v43 = vpop.f32.mrf.mxu1  ;;  %v819_v44 = vadd.f32 %v2016_v59, %v780_v30  ;;  %v835_v45 = vadd.f32 %v2016_v59, %v796_v31 }
 0x14c   : > { %v781_v46 = vmul.f32 %v1446_v38, %v2009_v51  ;;  %v797_v47 = vmul.f32 %v1494_v39, %v2009_v51  ;;  %1388 = vst [vmem:[%s2027_s9 + $0x18] sm:$0xff] %v1324_v40   ;;  %1396 = vst [vmem:[%s2027_s9 + $0x58] sm:$0xff] %v1364_v41  }
 0x14d   : > { %v1448_v48 = vpop.f32.mrf.mxu0  ;;  %v1496_v49 = vpop.f32.mrf.mxu1  ;;  %v851_v57 = vmax.f32 %v819_v44, 0.0  ;;  %v867_v58 = vmax.f32 %v835_v45, 0.0 }
 0x14e   : > { %v820_v50 = vadd.f32 %v2016_v59, %v781_v46  ;;  %v836_v52 = vadd.f32 %v2016_v59, %v797_v47  ;;  %v1449_v53 = vadd.f32 %v1448_v48, %v1447_v42  ;;  %v1497_v54 = vadd.f32 %v1496_v49, %v1495_v43 }
 0x14f   : > { %v1450_v55 = vpop.f32.mrf.mxu0  ;;  %v1498_v56 = vpop.f32.mrf.mxu1 }
 0x150   : > { %v852_v60 = vmax.f32 %v820_v50, 0.0  ;;  %v868_v61 = vmax.f32 %v836_v52, 0.0  ;;  %v782_v62 = vmul.f32 %v1449_v53, %v2009_v51  ;;  %v798_v63 = vmul.f32 %v1497_v54, %v2009_v51 }
 0x151   : > { %v1451_v0 = vpop.f32.mrf.mxu0  ;;  %v1499_v1 = vpop.f32.mrf.mxu1 }
 0x152   : > { %v1329_v2 = vpack.c.bf16 %v852_v60, %v851_v57  ;;  %v1369_v3 = vpack.c.bf16 %v868_v61, %v867_v58  ;;  %v1452_v4 = vadd.f32 %v1451_v0, %v1450_v55  ;;  %v1500_v5 = vadd.f32 %v1499_v1, %v1498_v56 }
 0x153   : > { %v1453_v6 = vpop.f32.mrf.mxu0  ;;  %v1501_v7 = vpop.f32.mrf.mxu1  ;;  %v821_v8 = vadd.f32 %v2016_v59, %v782_v62  ;;  %v837_v9 = vadd.f32 %v2016_v59, %v798_v63 }
 0x154   : > { %1389 = vst [vmem:[%s2027_s9 + $0x20] sm:$0xff] %v1329_v2   ;;  %1397 = vst [vmem:[%s2027_s9 + $0x60] sm:$0xff] %v1369_v3   ;;  %v783_v10 = vmul.f32 %v1452_v4, %v2009_v51  ;;  %v799_v11 = vmul.f32 %v1500_v5, %v2009_v51 }
 0x155   : > { %v1454_v12 = vpop.f32.mrf.mxu0  ;;  %v1502_v13 = vpop.f32.mrf.mxu1  ;;  %v853_v22 = vmax.f32 %v821_v8, 0.0  ;;  %v869_v23 = vmax.f32 %v837_v9, 0.0 }
 0x156   : > { %v1455_v14 = vadd.f32 %v1454_v12, %v1453_v6  ;;  %v1503_v15 = vadd.f32 %v1502_v13, %v1501_v7  ;;  %v822_v16 = vadd.f32 %v2016_v59, %v783_v10  ;;  %v838_v17 = vadd.f32 %v2016_v59, %v799_v11 }
 0x157   : > { %v1456_v18 = vpop.f32.mrf.mxu0  ;;  %v1504_v19 = vpop.f32.mrf.mxu1 }
 0x158   : > { %v784_v20 = vmul.f32 %v1455_v14, %v2009_v51  ;;  %v800_v21 = vmul.f32 %v1503_v15, %v2009_v51  ;;  %v854_v24 = vmax.f32 %v822_v16, 0.0  ;;  %v870_v25 = vmax.f32 %v838_v17, 0.0 }
 0x159   : > { %v1457_v26 = vpop.f32.mrf.mxu0  ;;  %v1505_v27 = vpop.f32.mrf.mxu1 }
 0x15a   : > { %v1458_v28 = vadd.f32 %v1457_v26, %v1456_v18  ;;  %v1506_v29 = vadd.f32 %v1505_v27, %v1504_v19  ;;  %v1334_v30 = vpack.c.bf16 %v854_v24, %v853_v22  ;;  %v1374_v31 = vpack.c.bf16 %v870_v25, %v869_v23 }
 0x15b   : > { %v1459_v32 = vpop.f32.mrf.mxu0  ;;  %v1507_v33 = vpop.f32.mrf.mxu1  ;;  %v823_v34 = vadd.f32 %v2016_v59, %v784_v20  ;;  %v839_v35 = vadd.f32 %v2016_v59, %v800_v21 }
 0x15c   : > { %v785_v36 = vmul.f32 %v1458_v28, %v2009_v51  ;;  %v801_v37 = vmul.f32 %v1506_v29, %v2009_v51  ;;  %1390 = vst [vmem:[%s2027_s9 + $0x28] sm:$0xff] %v1334_v30   ;;  %1398 = vst [vmem:[%s2027_s9 + $0x68] sm:$0xff] %v1374_v31  }
 0x15d   : > { %v1460_v38 = vpop.f32.mrf.mxu0  ;;  %v1508_v39 = vpop.f32.mrf.mxu1  ;;  %v855_v46 = vmax.f32 %v823_v34, 0.0  ;;  %v871_v47 = vmax.f32 %v839_v35, 0.0 }
 0x15e   : > { %v824_v40 = vadd.f32 %v2016_v59, %v785_v36  ;;  %v840_v41 = vadd.f32 %v2016_v59, %v801_v37  ;;  %v1461_v42 = vadd.f32 %v1460_v38, %v1459_v32  ;;  %v1509_v43 = vadd.f32 %v1508_v39, %v1507_v33 }
 0x15f   : > { %v1462_v44 = vpop.f32.mrf.mxu0  ;;  %v1510_v45 = vpop.f32.mrf.mxu1 }
 0x160   : > { %v856_v48 = vmax.f32 %v824_v40, 0.0  ;;  %v872_v49 = vmax.f32 %v840_v41, 0.0  ;;  %v786_v50 = vmul.f32 %v1461_v42, %v2009_v51  ;;  %v802_v52 = vmul.f32 %v1509_v43, %v2009_v51 }
 0x161   : > { %v1463_v53 = vpop.f32.mrf.mxu0  ;;  %v1511_v54 = vpop.f32.mrf.mxu1 }
 0x162   : > { %v1339_v55 = vpack.c.bf16 %v856_v48, %v855_v46  ;;  %v1379_v56 = vpack.c.bf16 %v872_v49, %v871_v47  ;;  %v1464_v57 = vadd.f32 %v1463_v53, %v1462_v44  ;;  %v1512_v58 = vadd.f32 %v1511_v54, %v1510_v45 }
 0x163   : > { %v825_v60 = vadd.f32 %v2016_v59, %v786_v50  ;;  %v841_v61 = vadd.f32 %v2016_v59, %v802_v52 }
 0x164   : > { %1391 = vst [vmem:[%s2027_s9 + $0x30] sm:$0xff] %v1339_v55   ;;  %1399 = vst [vmem:[%s2027_s9 + $0x70] sm:$0xff] %v1379_v56   ;;  %v787_v62 = vmul.f32 %v1464_v57, %v2009_v51  ;;  %v803_v63 = vmul.f32 %v1512_v58, %v2009_v51 }
 0x165   : > { %v857_v2 = vmax.f32 %v825_v60, 0.0  ;;  %v873_v3 = vmax.f32 %v841_v61, 0.0 }
 0x166   : > { %v826_v0 = vadd.f32 %v2016_v59, %v787_v62  ;;  %v842_v1 = vadd.f32 %v2016_v59, %v803_v63 }
 0x168   : > { %v858_v4 = vmax.f32 %v826_v0, 0.0  ;;  %v874_v5 = vmax.f32 %v842_v1, 0.0 }
 0x16a   : > { %v1344_v51 = vpack.c.bf16 %v858_v4, %v857_v2  ;;  %v1384_v6 = vpack.c.bf16 %v874_v5, %v873_v3 }
 0x16c   : > { %1392 = vst [vmem:[%s2027_s9 + $0x38] sm:$0xff] %v1344_v51   ;;  %1400 = vst [vmem:[%s2027_s9 + $0x78] sm:$0xff] %v1384_v6  }
 0x16d   : > { %1739 = shalt.err (!%p1736_p3)
}
 0x16e   : > { %s1740_s6 = scalar_lea.hbm %s2102_s29, 2048  ;;  %s1744_s27 = scalar_lea.hbm %s2157_s4, 16384 }
 0x16f   : > { %p1741_p5 = scmp.ne.s32.totalorder %s2102_s29, %s1740_s6  ;;  %p1745_p6 = scmp.lt.s32.totalorder %s2102_s29, %s2157_s4 }
 0x170   : > { %p1746_p11 = scmp.lt.s32.totalorder %s1744_s27, %s1740_s6 }
 0x171   : > { %p1742_p7 = pnand %p1741_p5, %p2170_p4 }
 0x172   : > { %p1747_p10 = por %p1746_p11, %p1745_p6 }
 0x173   : > { %p1743_p9 = pneg %p1742_p7 }
 0x175   : > { %p1748_p1 = pnand %p1747_p10, %p1743_p9 }
 0x177   : > { %1751 = shalt.err (!%p1748_p1)
}
 0x178   : > { %s1819_s9 = smov 64   ;;  %s1820_s24 = smov 4  }
 0x179   : > { %1535 = dma.vmem_to_hbm [thread:$0]  (%p2170_p4), %s2104_s10, 2048, %s2102_s29, %s1036_s18, %s1819_s9, %s1819_s9, %s1820_s24  }
 0x17a PF: > { %p1552_p8 = scmp.ge.s32.totalorder %s1810_s20, 2  ;;  %s1065_s14 = sand.u32 1, %s1790_s15  }
 0x17b   : > { %p2171_p12 = scmp.ne.s32.totalorder %s2163_s26, 0  ;;  %s1066_s11 = scalar_lea.sflag [#allocation4], %s1065_s14 }
 0x17d   : > { %p1546_p13 = pnand %p1552_p8, %p2171_p12 }
 0x17f   : > { %p1547_p0 = pneg %p1546_p13 }
 0x181   : > { %1785 = dma.done.wait (%p1547_p0), %s1066_s11, 2048  }
 0x182   : > { %1787 = vsyncadd (%p1547_p0), %s1066_s11, 4294965248  ;;  %s21_s20 = sadd.s32 1, %s1810_s20   ;;  %s2172_s15 = smov %s1794_s16 }
 0x183   : > { %p18_p2 = scmp.ge.s32.totalorder %s21_s20, 10   ;;  %s2173_s16 = smov %s1798_s17 }
 0x184   : > { %s2174_s17 = smov %s1941_s28  ;;  %s2175_s18 = smov %s1806_s19 }
 0x185   : > { %s2176_s19 = smov %s2178_s5  ;;  %20 = sbr.rel (!%p18_p2) target bundleno = 9 (0x9), region = 92 }
 0x18a   :  { %1071 = vsyncpa [#allocation3], 1 }
 0x18b   :  { %1073 = vsyncpa [#allocation3 + $0x1], 1 }
 0x18c   :  { %1074 = vsyncpa [#allocation6], 1 }
 0x18d   :  { %1075 = vsyncpa [#allocation4], 1 }
 0x18e   :  { %1077 = vsyncpa [#allocation4 + $0x1], 1 }

</bundles_post_ra>
